<compile_context>
chip_gen: v5e
topology: v5e:2x2
jax: 0.10.0
libtpu: 0.0.40
codegen_flags: <defaults>
</compile_context>

<pallas_src>
import numpy as np
import jax
import jax.numpy as jnp
from jax import lax
from jax.experimental import pallas as pl
from jax.experimental.pallas import tpu as pltpu

# ---------------- model hyper-parameters (consistent with the module) --------
IN_FEAT = 4            # X_train.shape[1]
HIDDEN = 8             # SimpleCNN.fc1 output size
N_CLASSES = 3          # len(torch.unique(y_train))
N_PARAMS = IN_FEAT * HIDDEN + HIDDEN + HIDDEN * N_CLASSES + N_CLASSES   # 67
N_QUBITS = int(np.ceil(np.log2(N_PARAMS)))    # 7
N_STATES = 2 ** N_QUBITS                      # 128 == TPU lane width
Q_DEPTH = 1
Q_DELTA = 0.4
MAP_H = 2                                     # MappingModel hidden_sizes = [2]
EASY_SCALE = 2.0 ** (N_QUBITS - 1)
GAMMA, BETA, ALPHA = 0.1, 0.8, 0.3
BETA_POW_ALPHA = BETA ** ALPHA                # folded on host
LANE = 128                                    # lane-dense padding width

# -- offsets into the packed SMEM scalar operand -------------------------------
OFF_PM = 0                                    # per-qubit (a0+a1)/2  (7)
OFF_PD = N_QUBITS                             # per-qubit (a1-a0)/2  (7)
OFF_WIN = 2 * N_QUBITS                        # MappingModel input weight (2,8) row-major
OFF_BIN = OFF_WIN + MAP_H * (N_QUBITS + 1)    # input bias (2)
OFF_WOUT = OFF_BIN + MAP_H                    # output weight (2)
OFF_BOUT = OFF_WOUT + MAP_H                   # output bias (1)
NSCAL = OFF_BOUT + 1                          # 35

# -- offsets of the generated SimpleCNN params inside the mapped row -----------
OFF_W1 = 0                                    # fc1.weight (8,4) row-major
OFF_B1 = HIDDEN * IN_FEAT                     # 32: fc1.bias (8)
OFF_W2 = OFF_B1 + HIDDEN                      # 40: fc2.weight (3,8) row-major
OFF_B2 = OFF_W2 + HIDDEN * N_CLASSES          # 64: fc2.bias (3)

# these let the in-kernel index math use cheap bit masks instead of mod/div
assert OFF_W1 % IN_FEAT == 0 and OFF_W2 % HIDDEN == 0
assert IN_FEAT & (IN_FEAT - 1) == 0 and HIDDEN & (HIDDEN - 1) == 0


# ----------------------------- fused Pallas kernel ----------------------------
def fused_kernel(scal_ref, x_ref, out_ref, mapped_ref):
    # ---- unpack packed scalars from SMEM (cheap scalar reads) ----------------
    pm_m = [scal_ref[OFF_PM + i] for i in range(N_QUBITS)]
    pm_d = [scal_ref[OFF_PD + i] for i in range(N_QUBITS)]
    w_in = [[scal_ref[OFF_WIN + j * (N_QUBITS + 1) + i] for i in range(N_QUBITS + 1)]
            for j in range(MAP_H)]
    b_in = [scal_ref[OFF_BIN + j] for j in range(MAP_H)]
    w_out = [scal_ref[OFF_WOUT + j] for j in range(MAP_H)]
    b_out = scal_ref[OFF_BOUT]

    # ---- quantum probs -> feature -> MappingModel: ONE (1,128) vreg ----------
    q = lax.broadcasted_iota(jnp.int32, (1, N_STATES), 1)          # state index
    # hoisted bit extraction: +-1 qubit state of wire i (wire 0 = MSB, PennyLane
    # ordering); reused by both the probability product and the hidden units.
    pm = [(2 * ((q >> (N_QUBITS - 1 - i)) & 1) - 1).astype(jnp.float32)
          for i in range(N_QUBITS)]

    # probs(k) = prod_i per-qubit prob selected by bit i (exact: CZ is diagonal)
    p = pm_m[0] + pm_d[0] * pm[0]
    for i in range(1, N_QUBITS):
        p = p * (pm_m[i] + pm_d[i] * pm[i])
    # x_ = (beta*tanh(gamma*2^(n-1)*|probs|^2))^alpha ; probs >= 0 so |.|^2 = p*p,
    # beta^alpha folded on host, pow(., 0.3) as exactly one log + one exp (EUP).
    t = jnp.tanh((GAMMA * EASY_SCALE) * (p * p))
    x_full = BETA_POW_ALPHA * jnp.exp(ALPHA * jnp.log(t))
    xv = x_full - jnp.mean(x_full)

    mapped = None
    for j in range(MAP_H):
        hj = b_in[j] + w_in[j][N_QUBITS] * xv
        for i in range(N_QUBITS):
            hj = hj + w_in[j][i] * pm[i]
        hj = jnp.maximum(hj, 0.0)                                   # relu (input layer)
        mapped = w_out[j] * hj if mapped is None else mapped + w_out[j] * hj
    mapped = mapped + b_out                                         # (1, 128)
    mapped_ref[...] = mapped                                        # lane-dense store

    # ---- probs_to_weights + generated SimpleCNN, fused -----------------------
    # The mapped row is never recomputed: the weight gather is expressed as 0/1
    # selection matmuls on the otherwise-idle MXU, and every weight*activation
    # product is formed exactly in f32 on the VPU before the MXU sums it.
    #   fc1:  h[b,j]   = sum_c x[b,c]*mapped[4j+c]    + mapped[32+j]
    #   fc2:  out[b,k] = sum_j h[b,j]*mapped[40+8k+j] + mapped[64+k]

    # fc1 ----------------------------------------------------------------------
    c1 = lax.broadcasted_iota(jnp.int32, (IN_FEAT, N_STATES), 0)
    qr1 = lax.broadcasted_iota(jnp.int32, (IN_FEAT, N_STATES), 1)
    rep1 = jnp.where((qr1 < OFF_B1) & ((qr1 & (IN_FEAT - 1)) == c1), 1.0, 0.0)
    ones1 = jnp.where((q >= OFF_B1) & (q < OFF_W2), 1.0, 0.0)       # fc1.bias lanes
    act1 = jnp.dot(x_ref[...], rep1, preferred_element_type=jnp.float32) + ones1
    prod1 = act1 * mapped                                           # exact VPU products

    qs1 = lax.broadcasted_iota(jnp.int32, (N_STATES, HIDDEN), 0)
    js1 = lax.broadcasted_iota(jnp.int32, (N_STATES, HIDDEN), 1)
    sel1 = jnp.where(((qs1 < OFF_B1) & ((qs1 >> 2) == js1)) | (qs1 == OFF_B1 + js1),
                     1.0, 0.0)
    h = jnp.maximum(jnp.dot(prod1, sel1, preferred_element_type=jnp.float32), 0.0)

    # fc2 ----------------------------------------------------------------------
    j2 = lax.broadcasted_iota(jnp.int32, (HIDDEN, N_STATES), 0)
    qr2 = lax.broadcasted_iota(jnp.int32, (HIDDEN, N_STATES), 1)
    # (q - 40) % 8 == q & 7 because OFF_W2 % HIDDEN == 0
    rep2 = jnp.where((qr2 >= OFF_W2) & (qr2 < OFF_B2) & ((qr2 & (HIDDEN - 1)) == j2),
                     1.0, 0.0)
    ones2 = jnp.where((q >= OFF_B2) & (q < N_PARAMS), 1.0, 0.0)     # fc2.bias lanes
    act2 = jnp.dot(h, rep2, preferred_element_type=jnp.float32) + ones2
    prod2 = act2 * mapped

    qs2 = lax.broadcasted_iota(jnp.int32, (N_STATES, LANE), 0)
    ks2 = lax.broadcasted_iota(jnp.int32, (N_STATES, LANE), 1)
    sel2 = jnp.where(((qs2 >= OFF_W2) & (qs2 < OFF_B2) & (((qs2 - OFF_W2) >> 3) == ks2))
                     | ((qs2 >= OFF_B2) & (qs2 < N_PARAMS) & ((qs2 - OFF_B2) == ks2)),
                     1.0, 0.0)
    # lanes >= N_CLASSES of sel2 are all zero -> the (B,128) output slab is
    # lane-dense and already padded; the wrapper slices [:, :N_CLASSES].
    out_ref[...] = jnp.dot(prod2, sel2, preferred_element_type=jnp.float32)


def run_fused(scal, x_pad):
    b_pad = x_pad.shape[0]
    return pl.pallas_call(
        fused_kernel,
        out_shape=(jax.ShapeDtypeStruct((b_pad, LANE), jnp.float32),     # classifier (padded)
                   jax.ShapeDtypeStruct((1, N_STATES), jnp.float32)),    # mapping output
        in_specs=[
            pl.BlockSpec(memory_space=pltpu.MemorySpace.SMEM),   # packed scalars
            pl.BlockSpec(memory_space=pltpu.MemorySpace.VMEM),   # classifier input x
        ],
        out_specs=(
            pl.BlockSpec(memory_space=pltpu.MemorySpace.VMEM),
            pl.BlockSpec(memory_space=pltpu.MemorySpace.VMEM),
        ),
        # TODO(synk): when the batch grows, add a batch grid axis (>=256-row
        # blocks) with dimension_semantics=("parallel",) so v7x shards across
        # both TensorCores, and compute the mapped row / selection matrices once
        # under pl.when(pl.program_id(0) == 0) into VMEM scratch.
    )(scal, x_pad)


# ----------------------------- full forward ----------------------------------
def lew_hybrid_forward(x, params):
    # Per-qubit probabilities after H -> RY(theta): amplitudes (c -/+ s)/sqrt(2).
    theta = params["q_params"].reshape(Q_DEPTH, N_QUBITS)[0]
    c, s = jnp.cos(theta * 0.5), jnp.sin(theta * 0.5)
    a0 = (c - s) ** 2 * 0.5
    a1 = (c + s) ** 2 * 0.5

    # Pack every small operand into one SMEM array (single tiny DMA);
    # pre-fold the per-qubit (mean, half-diff) used with the +-1 state values.
    scal = jnp.concatenate([
        0.5 * (a0 + a1), 0.5 * (a1 - a0),
        params["map_w_in"].reshape(-1),
        params["map_b_in"].reshape(-1),
        params["map_w_out"].reshape(-1),
        params["map_b_out"].reshape(-1),
    ]).astype(jnp.float32)
    assert scal.shape == (NSCAL,)

    # sublane-pad the batch to a multiple of 8 rows (unmasked vld/vst).
    b = x.shape[0]
    b_pad = -(-b // 8) * 8
    x_pad = jnp.pad(x.astype(jnp.float32), ((0, b_pad - b), (0, 0)))

    out_pad, mapped = run_fused(scal, x_pad)
    out = out_pad[:b, :N_CLASSES]

    # probs_to_weights: build the SimpleCNN state_dict (returned, like PyTorch).
    flat = mapped[0, :N_PARAMS]
    state_dict, idx = {}, 0
    for name, shp in (("fc1.weight", (HIDDEN, IN_FEAT)),
                      ("fc1.bias", (HIDDEN,)),
                      ("fc2.weight", (N_CLASSES, HIDDEN)),
                      ("fc2.bias", (N_CLASSES,))):
        n = int(np.prod(shp))
        state_dict[name] = flat[idx:idx + n].reshape(shp)
        idx += n
    return out, state_dict


# ----------------------------- parameter init --------------------------------
def init_params(key):
    ks = jax.random.split(key, 5)

    def torch_linear_init(kw, kb, out_f, in_f):
        bound = 1.0 / np.sqrt(in_f)
        w = jax.random.uniform(kw, (out_f, in_f), jnp.float32, -bound, bound)
        b = jax.random.uniform(kb, (out_f,), jnp.float32, -bound, bound)
        return w, b

    q_params = Q_DELTA * jax.random.normal(ks[0], (Q_DEPTH * N_QUBITS,), jnp.float32)
    w_in, b_in = torch_linear_init(ks[1], ks[2], MAP_H, N_QUBITS + 1)
    w_out, b_out = torch_linear_init(ks[3], ks[4], 1, MAP_H)
    return {"q_params": q_params,
            "map_w_in": w_in, "map_b_in": b_in,
            "map_w_out": w_out, "map_b_out": b_out}


# ----------------------------- pure-JAX reference (for sanity check) ---------
def _qubit_states():
    k = np.arange(N_STATES)
    shifts = (N_QUBITS - 1 - np.arange(N_QUBITS))[None, :]
    bits = (k[:, None] >> shifts) & 1
    return jnp.asarray(bits * 2 - 1, dtype=jnp.float32)


def reference_forward(x, params):
    hi_prec = jax.lax.Precision.HIGHEST
    theta = params["q_params"].reshape(Q_DEPTH, N_QUBITS)[0]
    c, s = jnp.cos(theta * 0.5), jnp.sin(theta * 0.5)
    per_qubit = jnp.stack([(c - s) ** 2 * 0.5, (c + s) ** 2 * 0.5], axis=1)
    probs = jnp.ones((1,), jnp.float32)
    for i in range(N_QUBITS):
        probs = jnp.kron(probs, per_qubit[i])
    x_ = (BETA * jnp.tanh(GAMMA * EASY_SCALE * jnp.abs(probs) ** 2)) ** ALPHA
    x_ = x_ - jnp.mean(x_)
    combined = jnp.concatenate([_qubit_states(), x_[:, None]], axis=1)
    h = jnp.maximum(jnp.dot(combined, params["map_w_in"].T, precision=hi_prec)
                    + params["map_b_in"], 0.0)
    mapped = jnp.dot(h, params["map_w_out"].T, precision=hi_prec) + params["map_b_out"]
    flat = mapped.reshape(-1)[:N_PARAMS]
    w1, b1 = flat[:OFF_B1].reshape(HIDDEN, IN_FEAT), flat[OFF_B1:OFF_W2]
    w2, b2 = flat[OFF_W2:OFF_B2].reshape(N_CLASSES, HIDDEN), flat[OFF_B2:N_PARAMS]
    h1 = jnp.maximum(jnp.dot(x, w1.T, precision=hi_prec) + b1, 0.0)
    out = jnp.dot(h1, w2.T, precision=hi_prec) + b2
    return out, flat


# ----------------------------- main -------------------------------------------
if __name__ == "__main__":
    key = jax.random.PRNGKey(0)
    kx, kp = jax.random.split(key)
    x = jax.random.normal(kx, (2, IN_FEAT), jnp.float32)   # batch=2 input samples
    params = init_params(kp)

    out, state_dict = jax.jit(lew_hybrid_forward)(x, params)
    jax.block_until_ready(out)
    jax.block_until_ready(state_dict)
    assert out.shape == (2, N_CLASSES)
    assert state_dict["fc1.weight"].shape == (HIDDEN, IN_FEAT)
    assert state_dict["fc2.weight"].shape == (N_CLASSES, HIDDEN)

    # numerical sanity check against a pure-JAX reference of the PyTorch forward
    ref_out, ref_flat = reference_forward(x, params)
    kernel_flat = jnp.concatenate([state_dict["fc1.weight"].reshape(-1),
                                   state_dict["fc1.bias"],
                                   state_dict["fc2.weight"].reshape(-1),
                                   state_dict["fc2.bias"]])
    np.testing.assert_allclose(np.asarray(kernel_flat), np.asarray(ref_flat),
                               rtol=1e-4, atol=1e-4)
    # The weight*activation products are formed exactly on the VPU; the only
    # remaining difference is how the MXU sums the 0/1-selected f32 terms, so
    # the tolerance is much tighter than the previous 5e-2.
    np.testing.assert_allclose(np.asarray(out), np.asarray(ref_out),
                               rtol=2e-2, atol=2e-2)
    print("KERNEL_OK")
</pallas_src>

<mosaic_0001>
module attributes {stable_mosaic.version = 11 : i64} {
  func.func @fused_kernel(%arg0: memref<35xf32, #tpu.memory_space<smem>>, %arg1: memref<8x4xf32, #tpu.memory_space<vmem>>, %arg2: memref<8x128xf32, #tpu.memory_space<vmem>>, %arg3: memref<1x128xf32, #tpu.memory_space<vmem>>) attributes {dimension_semantics = [], scalar_prefetch = 0 : i64, scratch_operands = 0 : i64, tpu.core_type = #tpu.core_type<tc>} {
    %c0 = arith.constant 0 : index
    %0 = memref.load %arg0[%c0] : memref<35xf32, #tpu.memory_space<smem>>
    %c1 = arith.constant 1 : index
    %1 = memref.load %arg0[%c1] : memref<35xf32, #tpu.memory_space<smem>>
    %c2 = arith.constant 2 : index
    %2 = memref.load %arg0[%c2] : memref<35xf32, #tpu.memory_space<smem>>
    %c3 = arith.constant 3 : index
    %3 = memref.load %arg0[%c3] : memref<35xf32, #tpu.memory_space<smem>>
    %c4 = arith.constant 4 : index
    %4 = memref.load %arg0[%c4] : memref<35xf32, #tpu.memory_space<smem>>
    %c5 = arith.constant 5 : index
    %5 = memref.load %arg0[%c5] : memref<35xf32, #tpu.memory_space<smem>>
    %c6 = arith.constant 6 : index
    %6 = memref.load %arg0[%c6] : memref<35xf32, #tpu.memory_space<smem>>
    %c7 = arith.constant 7 : index
    %7 = memref.load %arg0[%c7] : memref<35xf32, #tpu.memory_space<smem>>
    %c8 = arith.constant 8 : index
    %8 = memref.load %arg0[%c8] : memref<35xf32, #tpu.memory_space<smem>>
    %c9 = arith.constant 9 : index
    %9 = memref.load %arg0[%c9] : memref<35xf32, #tpu.memory_space<smem>>
    %c10 = arith.constant 10 : index
    %10 = memref.load %arg0[%c10] : memref<35xf32, #tpu.memory_space<smem>>
    %c11 = arith.constant 11 : index
    %11 = memref.load %arg0[%c11] : memref<35xf32, #tpu.memory_space<smem>>
    %c12 = arith.constant 12 : index
    %12 = memref.load %arg0[%c12] : memref<35xf32, #tpu.memory_space<smem>>
    %c13 = arith.constant 13 : index
    %13 = memref.load %arg0[%c13] : memref<35xf32, #tpu.memory_space<smem>>
    %c14 = arith.constant 14 : index
    %14 = memref.load %arg0[%c14] : memref<35xf32, #tpu.memory_space<smem>>
    %c15 = arith.constant 15 : index
    %15 = memref.load %arg0[%c15] : memref<35xf32, #tpu.memory_space<smem>>
    %c16 = arith.constant 16 : index
    %16 = memref.load %arg0[%c16] : memref<35xf32, #tpu.memory_space<smem>>
    %c17 = arith.constant 17 : index
    %17 = memref.load %arg0[%c17] : memref<35xf32, #tpu.memory_space<smem>>
    %c18 = arith.constant 18 : index
    %18 = memref.load %arg0[%c18] : memref<35xf32, #tpu.memory_space<smem>>
    %c19 = arith.constant 19 : index
    %19 = memref.load %arg0[%c19] : memref<35xf32, #tpu.memory_space<smem>>
    %c20 = arith.constant 20 : index
    %20 = memref.load %arg0[%c20] : memref<35xf32, #tpu.memory_space<smem>>
    %c21 = arith.constant 21 : index
    %21 = memref.load %arg0[%c21] : memref<35xf32, #tpu.memory_space<smem>>
    %c22 = arith.constant 22 : index
    %22 = memref.load %arg0[%c22] : memref<35xf32, #tpu.memory_space<smem>>
    %c23 = arith.constant 23 : index
    %23 = memref.load %arg0[%c23] : memref<35xf32, #tpu.memory_space<smem>>
    %c24 = arith.constant 24 : index
    %24 = memref.load %arg0[%c24] : memref<35xf32, #tpu.memory_space<smem>>
    %c25 = arith.constant 25 : index
    %25 = memref.load %arg0[%c25] : memref<35xf32, #tpu.memory_space<smem>>
    %c26 = arith.constant 26 : index
    %26 = memref.load %arg0[%c26] : memref<35xf32, #tpu.memory_space<smem>>
    %c27 = arith.constant 27 : index
    %27 = memref.load %arg0[%c27] : memref<35xf32, #tpu.memory_space<smem>>
    %c28 = arith.constant 28 : index
    %28 = memref.load %arg0[%c28] : memref<35xf32, #tpu.memory_space<smem>>
    %c29 = arith.constant 29 : index
    %29 = memref.load %arg0[%c29] : memref<35xf32, #tpu.memory_space<smem>>
    %c30 = arith.constant 30 : index
    %30 = memref.load %arg0[%c30] : memref<35xf32, #tpu.memory_space<smem>>
    %c31 = arith.constant 31 : index
    %31 = memref.load %arg0[%c31] : memref<35xf32, #tpu.memory_space<smem>>
    %c32 = arith.constant 32 : index
    %32 = memref.load %arg0[%c32] : memref<35xf32, #tpu.memory_space<smem>>
    %c33 = arith.constant 33 : index
    %33 = memref.load %arg0[%c33] : memref<35xf32, #tpu.memory_space<smem>>
    %c34 = arith.constant 34 : index
    %34 = memref.load %arg0[%c34] : memref<35xf32, #tpu.memory_space<smem>>
    %35 = tpu.iota {dimensions = array<i32: 1>} : vector<1x128xi32>
    %c6_i32 = arith.constant 6 : i32
    %36 = vector.broadcast %c6_i32 : i32 to vector<1x128xi32>
    %37 = arith.shrsi %35, %36 : vector<1x128xi32>
    %c1_i32 = arith.constant 1 : i32
    %38 = vector.broadcast %c1_i32 : i32 to vector<1x128xi32>
    %39 = arith.andi %37, %38 : vector<1x128xi32>
    %c2_i32 = arith.constant 2 : i32
    %40 = vector.broadcast %c2_i32 : i32 to vector<1x128xi32>
    %41 = arith.muli %40, %39 : vector<1x128xi32>
    %c1_i32_0 = arith.constant 1 : i32
    %42 = vector.broadcast %c1_i32_0 : i32 to vector<1x128xi32>
    %43 = arith.subi %41, %42 : vector<1x128xi32>
    %44 = arith.sitofp %43 : vector<1x128xi32> to vector<1x128xf32>
    %c5_i32 = arith.constant 5 : i32
    %45 = vector.broadcast %c5_i32 : i32 to vector<1x128xi32>
    %46 = arith.shrsi %35, %45 : vector<1x128xi32>
    %c1_i32_1 = arith.constant 1 : i32
    %47 = vector.broadcast %c1_i32_1 : i32 to vector<1x128xi32>
    %48 = arith.andi %46, %47 : vector<1x128xi32>
    %c2_i32_2 = arith.constant 2 : i32
    %49 = vector.broadcast %c2_i32_2 : i32 to vector<1x128xi32>
    %50 = arith.muli %49, %48 : vector<1x128xi32>
    %c1_i32_3 = arith.constant 1 : i32
    %51 = vector.broadcast %c1_i32_3 : i32 to vector<1x128xi32>
    %52 = arith.subi %50, %51 : vector<1x128xi32>
    %53 = arith.sitofp %52 : vector<1x128xi32> to vector<1x128xf32>
    %c4_i32 = arith.constant 4 : i32
    %54 = vector.broadcast %c4_i32 : i32 to vector<1x128xi32>
    %55 = arith.shrsi %35, %54 : vector<1x128xi32>
    %c1_i32_4 = arith.constant 1 : i32
    %56 = vector.broadcast %c1_i32_4 : i32 to vector<1x128xi32>
    %57 = arith.andi %55, %56 : vector<1x128xi32>
    %c2_i32_5 = arith.constant 2 : i32
    %58 = vector.broadcast %c2_i32_5 : i32 to vector<1x128xi32>
    %59 = arith.muli %58, %57 : vector<1x128xi32>
    %c1_i32_6 = arith.constant 1 : i32
    %60 = vector.broadcast %c1_i32_6 : i32 to vector<1x128xi32>
    %61 = arith.subi %59, %60 : vector<1x128xi32>
    %62 = arith.sitofp %61 : vector<1x128xi32> to vector<1x128xf32>
    %c3_i32 = arith.constant 3 : i32
    %63 = vector.broadcast %c3_i32 : i32 to vector<1x128xi32>
    %64 = arith.shrsi %35, %63 : vector<1x128xi32>
    %c1_i32_7 = arith.constant 1 : i32
    %65 = vector.broadcast %c1_i32_7 : i32 to vector<1x128xi32>
    %66 = arith.andi %64, %65 : vector<1x128xi32>
    %c2_i32_8 = arith.constant 2 : i32
    %67 = vector.broadcast %c2_i32_8 : i32 to vector<1x128xi32>
    %68 = arith.muli %67, %66 : vector<1x128xi32>
    %c1_i32_9 = arith.constant 1 : i32
    %69 = vector.broadcast %c1_i32_9 : i32 to vector<1x128xi32>
    %70 = arith.subi %68, %69 : vector<1x128xi32>
    %71 = arith.sitofp %70 : vector<1x128xi32> to vector<1x128xf32>
    %c2_i32_10 = arith.constant 2 : i32
    %72 = vector.broadcast %c2_i32_10 : i32 to vector<1x128xi32>
    %73 = arith.shrsi %35, %72 : vector<1x128xi32>
    %c1_i32_11 = arith.constant 1 : i32
    %74 = vector.broadcast %c1_i32_11 : i32 to vector<1x128xi32>
    %75 = arith.andi %73, %74 : vector<1x128xi32>
    %c2_i32_12 = arith.constant 2 : i32
    %76 = vector.broadcast %c2_i32_12 : i32 to vector<1x128xi32>
    %77 = arith.muli %76, %75 : vector<1x128xi32>
    %c1_i32_13 = arith.constant 1 : i32
    %78 = vector.broadcast %c1_i32_13 : i32 to vector<1x128xi32>
    %79 = arith.subi %77, %78 : vector<1x128xi32>
    %80 = arith.sitofp %79 : vector<1x128xi32> to vector<1x128xf32>
    %c1_i32_14 = arith.constant 1 : i32
    %81 = vector.broadcast %c1_i32_14 : i32 to vector<1x128xi32>
    %82 = arith.shrsi %35, %81 : vector<1x128xi32>
    %c1_i32_15 = arith.constant 1 : i32
    %83 = vector.broadcast %c1_i32_15 : i32 to vector<1x128xi32>
    %84 = arith.andi %82, %83 : vector<1x128xi32>
    %c2_i32_16 = arith.constant 2 : i32
    %85 = vector.broadcast %c2_i32_16 : i32 to vector<1x128xi32>
    %86 = arith.muli %85, %84 : vector<1x128xi32>
    %c1_i32_17 = arith.constant 1 : i32
    %87 = vector.broadcast %c1_i32_17 : i32 to vector<1x128xi32>
    %88 = arith.subi %86, %87 : vector<1x128xi32>
    %89 = arith.sitofp %88 : vector<1x128xi32> to vector<1x128xf32>
    %c0_i32 = arith.constant 0 : i32
    %90 = vector.broadcast %c0_i32 : i32 to vector<1x128xi32>
    %91 = arith.shrsi %35, %90 : vector<1x128xi32>
    %c1_i32_18 = arith.constant 1 : i32
    %92 = vector.broadcast %c1_i32_18 : i32 to vector<1x128xi32>
    %93 = arith.andi %91, %92 : vector<1x128xi32>
    %c2_i32_19 = arith.constant 2 : i32
    %94 = vector.broadcast %c2_i32_19 : i32 to vector<1x128xi32>
    %95 = arith.muli %94, %93 : vector<1x128xi32>
    %c1_i32_20 = arith.constant 1 : i32
    %96 = vector.broadcast %c1_i32_20 : i32 to vector<1x128xi32>
    %97 = arith.subi %95, %96 : vector<1x128xi32>
    %98 = arith.sitofp %97 : vector<1x128xi32> to vector<1x128xf32>
    %99 = vector.broadcast %7 : f32 to vector<1x128xf32>
    %100 = arith.mulf %99, %44 : vector<1x128xf32>
    %101 = vector.broadcast %0 : f32 to vector<1x128xf32>
    %102 = arith.addf %101, %100 : vector<1x128xf32>
    %103 = vector.broadcast %8 : f32 to vector<1x128xf32>
    %104 = arith.mulf %103, %53 : vector<1x128xf32>
    %105 = vector.broadcast %1 : f32 to vector<1x128xf32>
    %106 = arith.addf %105, %104 : vector<1x128xf32>
    %107 = arith.mulf %102, %106 : vector<1x128xf32>
    %108 = vector.broadcast %9 : f32 to vector<1x128xf32>
    %109 = arith.mulf %108, %62 : vector<1x128xf32>
    %110 = vector.broadcast %2 : f32 to vector<1x128xf32>
    %111 = arith.addf %110, %109 : vector<1x128xf32>
    %112 = arith.mulf %107, %111 : vector<1x128xf32>
    %113 = vector.broadcast %10 : f32 to vector<1x128xf32>
    %114 = arith.mulf %113, %71 : vector<1x128xf32>
    %115 = vector.broadcast %3 : f32 to vector<1x128xf32>
    %116 = arith.addf %115, %114 : vector<1x128xf32>
    %117 = arith.mulf %112, %116 : vector<1x128xf32>
    %118 = vector.broadcast %11 : f32 to vector<1x128xf32>
    %119 = arith.mulf %118, %80 : vector<1x128xf32>
    %120 = vector.broadcast %4 : f32 to vector<1x128xf32>
    %121 = arith.addf %120, %119 : vector<1x128xf32>
    %122 = arith.mulf %117, %121 : vector<1x128xf32>
    %123 = vector.broadcast %12 : f32 to vector<1x128xf32>
    %124 = arith.mulf %123, %89 : vector<1x128xf32>
    %125 = vector.broadcast %5 : f32 to vector<1x128xf32>
    %126 = arith.addf %125, %124 : vector<1x128xf32>
    %127 = arith.mulf %122, %126 : vector<1x128xf32>
    %128 = vector.broadcast %13 : f32 to vector<1x128xf32>
    %129 = arith.mulf %128, %98 : vector<1x128xf32>
    %130 = vector.broadcast %6 : f32 to vector<1x128xf32>
    %131 = arith.addf %130, %129 : vector<1x128xf32>
    %132 = arith.mulf %127, %131 : vector<1x128xf32>
    %133 = arith.mulf %132, %132 : vector<1x128xf32>
    %cst = arith.constant 6.400000e+00 : f32
    %134 = vector.broadcast %cst : f32 to vector<1x128xf32>
    %135 = arith.mulf %134, %133 : vector<1x128xf32>
    %136 = math.tanh %135 : vector<1x128xf32>
    %137 = math.log %136 : vector<1x128xf32>
    %cst_21 = arith.constant 3.000000e-01 : f32
    %138 = vector.broadcast %cst_21 : f32 to vector<1x128xf32>
    %139 = arith.mulf %138, %137 : vector<1x128xf32>
    %140 = math.exp %139 : vector<1x128xf32>
    %cst_22 = arith.constant 0.935248434 : f32
    %141 = vector.broadcast %cst_22 : f32 to vector<1x128xf32>
    %142 = arith.mulf %141, %140 : vector<1x128xf32>
    %143 = vector.shape_cast %142 : vector<1x128xf32> to vector<1x1x128xf32>
    %cst_23 = arith.constant dense<0.000000e+00> : vector<1xf32>
    %144 = vector.multi_reduction <add>, %143, %cst_23 [1, 2] : vector<1x1x128xf32> to vector<1xf32>
    %145 = vector.shape_cast %144 : vector<1xf32> to vector<1x1x1xf32>
    %146 = vector.extract %145[0, 0, 0] : f32 from vector<1x1x1xf32>
    %cst_24 = arith.constant 1.280000e+02 : f32
    %147 = arith.divf %146, %cst_24 : f32
    %148 = vector.broadcast %147 : f32 to vector<1x128xf32>
    %149 = arith.subf %142, %148 : vector<1x128xf32>
    %150 = vector.broadcast %21 : f32 to vector<1x128xf32>
    %151 = arith.mulf %150, %149 : vector<1x128xf32>
    %152 = vector.broadcast %30 : f32 to vector<1x128xf32>
    %153 = arith.addf %152, %151 : vector<1x128xf32>
    %154 = vector.broadcast %14 : f32 to vector<1x128xf32>
    %155 = arith.mulf %154, %44 : vector<1x128xf32>
    %156 = arith.addf %153, %155 : vector<1x128xf32>
    %157 = vector.broadcast %15 : f32 to vector<1x128xf32>
    %158 = arith.mulf %157, %53 : vector<1x128xf32>
    %159 = arith.addf %156, %158 : vector<1x128xf32>
    %160 = vector.broadcast %16 : f32 to vector<1x128xf32>
    %161 = arith.mulf %160, %62 : vector<1x128xf32>
    %162 = arith.addf %159, %161 : vector<1x128xf32>
    %163 = vector.broadcast %17 : f32 to vector<1x128xf32>
    %164 = arith.mulf %163, %71 : vector<1x128xf32>
    %165 = arith.addf %162, %164 : vector<1x128xf32>
    %166 = vector.broadcast %18 : f32 to vector<1x128xf32>
    %167 = arith.mulf %166, %80 : vector<1x128xf32>
    %168 = arith.addf %165, %167 : vector<1x128xf32>
    %169 = vector.broadcast %19 : f32 to vector<1x128xf32>
    %170 = arith.mulf %169, %89 : vector<1x128xf32>
    %171 = arith.addf %168, %170 : vector<1x128xf32>
    %172 = vector.broadcast %20 : f32 to vector<1x128xf32>
    %173 = arith.mulf %172, %98 : vector<1x128xf32>
    %174 = arith.addf %171, %173 : vector<1x128xf32>
    %cst_25 = arith.constant 0.000000e+00 : f32
    %175 = vector.broadcast %cst_25 : f32 to vector<1x128xf32>
    %176 = arith.maximumf %174, %175 : vector<1x128xf32>
    %177 = vector.broadcast %32 : f32 to vector<1x128xf32>
    %178 = arith.mulf %177, %176 : vector<1x128xf32>
    %179 = vector.broadcast %29 : f32 to vector<1x128xf32>
    %180 = arith.mulf %179, %149 : vector<1x128xf32>
    %181 = vector.broadcast %31 : f32 to vector<1x128xf32>
    %182 = arith.addf %181, %180 : vector<1x128xf32>
    %183 = vector.broadcast %22 : f32 to vector<1x128xf32>
    %184 = arith.mulf %183, %44 : vector<1x128xf32>
    %185 = arith.addf %182, %184 : vector<1x128xf32>
    %186 = vector.broadcast %23 : f32 to vector<1x128xf32>
    %187 = arith.mulf %186, %53 : vector<1x128xf32>
    %188 = arith.addf %185, %187 : vector<1x128xf32>
    %189 = vector.broadcast %24 : f32 to vector<1x128xf32>
    %190 = arith.mulf %189, %62 : vector<1x128xf32>
    %191 = arith.addf %188, %190 : vector<1x128xf32>
    %192 = vector.broadcast %25 : f32 to vector<1x128xf32>
    %193 = arith.mulf %192, %71 : vector<1x128xf32>
    %194 = arith.addf %191, %193 : vector<1x128xf32>
    %195 = vector.broadcast %26 : f32 to vector<1x128xf32>
    %196 = arith.mulf %195, %80 : vector<1x128xf32>
    %197 = arith.addf %194, %196 : vector<1x128xf32>
    %198 = vector.broadcast %27 : f32 to vector<1x128xf32>
    %199 = arith.mulf %198, %89 : vector<1x128xf32>
    %200 = arith.addf %197, %199 : vector<1x128xf32>
    %201 = vector.broadcast %28 : f32 to vector<1x128xf32>
    %202 = arith.mulf %201, %98 : vector<1x128xf32>
    %203 = arith.addf %200, %202 : vector<1x128xf32>
    %cst_26 = arith.constant 0.000000e+00 : f32
    %204 = vector.broadcast %cst_26 : f32 to vector<1x128xf32>
    %205 = arith.maximumf %203, %204 : vector<1x128xf32>
    %206 = vector.broadcast %33 : f32 to vector<1x128xf32>
    %207 = arith.mulf %206, %205 : vector<1x128xf32>
    %208 = arith.addf %178, %207 : vector<1x128xf32>
    %209 = vector.broadcast %34 : f32 to vector<1x128xf32>
    %210 = arith.addf %208, %209 : vector<1x128xf32>
    %c0_27 = arith.constant 0 : index
    %c0_28 = arith.constant 0 : index
    %211 = vector.load %arg3[%c0_27, %c0_28] : memref<1x128xf32, #tpu.memory_space<vmem>>, vector<1x128xf32>
    tpu.vector_store %arg3[%c0_27, %c0_28], %210 {strides = array<i32>} : memref<1x128xf32, #tpu.memory_space<vmem>>, vector<1x128xf32>,
    %212 = tpu.iota {dimensions = array<i32: 0>} : vector<4x128xi32>
    %213 = tpu.iota {dimensions = array<i32: 1>} : vector<4x128xi32>
    %c32_i32 = arith.constant 32 : i32
    %214 = vector.broadcast %c32_i32 : i32 to vector<4x128xi32>
    %215 = arith.cmpi slt, %213, %214 : vector<4x128xi32>
    %c3_i32_29 = arith.constant 3 : i32
    %216 = vector.broadcast %c3_i32_29 : i32 to vector<4x128xi32>
    %217 = arith.andi %213, %216 : vector<4x128xi32>
    %218 = arith.cmpi eq, %217, %212 : vector<4x128xi32>
    %219 = arith.andi %215, %218 : vector<4x128xi1>
    %cst_30 = arith.constant 1.000000e+00 : f32
    %cst_31 = arith.constant 0.000000e+00 : f32
    %220 = vector.broadcast %cst_30 : f32 to vector<4x128xf32>
    %221 = vector.broadcast %cst_31 : f32 to vector<4x128xf32>
    %222 = arith.select %219, %220, %221 : vector<4x128xi1>, vector<4x128xf32>
    %c32_i32_32 = arith.constant 32 : i32
    %223 = vector.broadcast %c32_i32_32 : i32 to vector<1x128xi32>
    %224 = arith.cmpi sge, %35, %223 : vector<1x128xi32>
    %c40_i32 = arith.constant 40 : i32
    %225 = vector.broadcast %c40_i32 : i32 to vector<1x128xi32>
    %226 = arith.cmpi slt, %35, %225 : vector<1x128xi32>
    %227 = arith.andi %224, %226 : vector<1x128xi1>
    %cst_33 = arith.constant 1.000000e+00 : f32
    %cst_34 = arith.constant 0.000000e+00 : f32
    %228 = vector.broadcast %cst_33 : f32 to vector<1x128xf32>
    %229 = vector.broadcast %cst_34 : f32 to vector<1x128xf32>
    %230 = arith.select %227, %228, %229 : vector<1x128xi1>, vector<1x128xf32>
    %c0_35 = arith.constant 0 : index
    %c0_36 = arith.constant 0 : index
    %231 = vector.load %arg1[%c0_35, %c0_36] : memref<8x4xf32, #tpu.memory_space<vmem>>, vector<8x4xf32>
    %cst_37 = arith.constant dense<0.000000e+00> : vector<8x128xf32>
    %232 = tpu.matmul %231, %222, %cst_37 {dimension_numbers = #tpu.dot_dimension_numbers<[1], [0], [0], [1], [0, 0, 1, 1], [], []>} : vector<8x4xf32>, vector<4x128xf32>, vector<8x128xf32> -> vector<8x128xf32>
    %233 = vector.broadcast %230 : vector<1x128xf32> to vector<8x128xf32>
    %234 = arith.addf %232, %233 : vector<8x128xf32>
    %235 = vector.broadcast %210 : vector<1x128xf32> to vector<8x128xf32>
    %236 = arith.mulf %234, %235 : vector<8x128xf32>
    %237 = tpu.iota {dimensions = array<i32: 0>} : vector<128x8xi32>
    %238 = tpu.iota {dimensions = array<i32: 1>} : vector<128x8xi32>
    %c32_i32_38 = arith.constant 32 : i32
    %239 = vector.broadcast %c32_i32_38 : i32 to vector<128x8xi32>
    %240 = arith.cmpi slt, %237, %239 : vector<128x8xi32>
    %c2_i32_39 = arith.constant 2 : i32
    %241 = vector.broadcast %c2_i32_39 : i32 to vector<128x8xi32>
    %242 = arith.shrsi %237, %241 : vector<128x8xi32>
    %243 = arith.cmpi eq, %242, %238 : vector<128x8xi32>
    %244 = arith.andi %240, %243 : vector<128x8xi1>
    %c32_i32_40 = arith.constant 32 : i32
    %245 = vector.broadcast %c32_i32_40 : i32 to vector<128x8xi32>
    %246 = arith.addi %245, %238 : vector<128x8xi32>
    %247 = arith.cmpi eq, %237, %246 : vector<128x8xi32>
    %248 = arith.ori %244, %247 : vector<128x8xi1>
    %cst_41 = arith.constant 1.000000e+00 : f32
    %cst_42 = arith.constant 0.000000e+00 : f32
    %249 = vector.broadcast %cst_41 : f32 to vector<128x8xf32>
    %250 = vector.broadcast %cst_42 : f32 to vector<128x8xf32>
    %251 = arith.select %248, %249, %250 : vector<128x8xi1>, vector<128x8xf32>
    %cst_43 = arith.constant dense<0.000000e+00> : vector<8x8xf32>
    %252 = tpu.matmul %236, %251, %cst_43 {dimension_numbers = #tpu.dot_dimension_numbers<[1], [0], [0], [1], [0, 0, 1, 1], [], []>} : vector<8x128xf32>, vector<128x8xf32>, vector<8x8xf32> -> vector<8x8xf32>
    %cst_44 = arith.constant 0.000000e+00 : f32
    %253 = vector.broadcast %cst_44 : f32 to vector<8x8xf32>
    %254 = arith.maximumf %252, %253 : vector<8x8xf32>
    %255 = tpu.iota {dimensions = array<i32: 0>} : vector<8x128xi32>
    %256 = tpu.iota {dimensions = array<i32: 1>} : vector<8x128xi32>
    %c40_i32_45 = arith.constant 40 : i32
    %257 = vector.broadcast %c40_i32_45 : i32 to vector<8x128xi32>
    %258 = arith.cmpi sge, %256, %257 : vector<8x128xi32>
    %c64_i32 = arith.constant 64 : i32
    %259 = vector.broadcast %c64_i32 : i32 to vector<8x128xi32>
    %260 = arith.cmpi slt, %256, %259 : vector<8x128xi32>
    %261 = arith.andi %258, %260 : vector<8x128xi1>
    %c7_i32 = arith.constant 7 : i32
    %262 = vector.broadcast %c7_i32 : i32 to vector<8x128xi32>
    %263 = arith.andi %256, %262 : vector<8x128xi32>
    %264 = arith.cmpi eq, %263, %255 : vector<8x128xi32>
    %265 = arith.andi %261, %264 : vector<8x128xi1>
    %cst_46 = arith.constant 1.000000e+00 : f32
    %cst_47 = arith.constant 0.000000e+00 : f32
    %266 = vector.broadcast %cst_46 : f32 to vector<8x128xf32>
    %267 = vector.broadcast %cst_47 : f32 to vector<8x128xf32>
    %268 = arith.select %265, %266, %267 : vector<8x128xi1>, vector<8x128xf32>
    %c64_i32_48 = arith.constant 64 : i32
    %269 = vector.broadcast %c64_i32_48 : i32 to vector<1x128xi32>
    %270 = arith.cmpi sge, %35, %269 : vector<1x128xi32>
    %c67_i32 = arith.constant 67 : i32
    %271 = vector.broadcast %c67_i32 : i32 to vector<1x128xi32>
    %272 = arith.cmpi slt, %35, %271 : vector<1x128xi32>
    %273 = arith.andi %270, %272 : vector<1x128xi1>
    %cst_49 = arith.constant 1.000000e+00 : f32
    %cst_50 = arith.constant 0.000000e+00 : f32
    %274 = vector.broadcast %cst_49 : f32 to vector<1x128xf32>
    %275 = vector.broadcast %cst_50 : f32 to vector<1x128xf32>
    %276 = arith.select %273, %274, %275 : vector<1x128xi1>, vector<1x128xf32>
    %cst_51 = arith.constant dense<0.000000e+00> : vector<8x128xf32>
    %277 = tpu.matmul %254, %268, %cst_51 {dimension_numbers = #tpu.dot_dimension_numbers<[1], [0], [0], [1], [0, 0, 1, 1], [], []>} : vector<8x8xf32>, vector<8x128xf32>, vector<8x128xf32> -> vector<8x128xf32>
    %278 = vector.broadcast %276 : vector<1x128xf32> to vector<8x128xf32>
    %279 = arith.addf %277, %278 : vector<8x128xf32>
    %280 = vector.broadcast %210 : vector<1x128xf32> to vector<8x128xf32>
    %281 = arith.mulf %279, %280 : vector<8x128xf32>
    %282 = tpu.iota {dimensions = array<i32: 0>} : vector<128x128xi32>
    %283 = tpu.iota {dimensions = array<i32: 1>} : vector<128x128xi32>
    %c40_i32_52 = arith.constant 40 : i32
    %284 = vector.broadcast %c40_i32_52 : i32 to vector<128x128xi32>
    %285 = arith.cmpi sge, %282, %284 : vector<128x128xi32>
    %c64_i32_53 = arith.constant 64 : i32
    %286 = vector.broadcast %c64_i32_53 : i32 to vector<128x128xi32>
    %287 = arith.cmpi slt, %282, %286 : vector<128x128xi32>
    %288 = arith.andi %285, %287 : vector<128x128xi1>
    %c40_i32_54 = arith.constant 40 : i32
    %289 = vector.broadcast %c40_i32_54 : i32 to vector<128x128xi32>
    %290 = arith.subi %282, %289 : vector<128x128xi32>
    %c3_i32_55 = arith.constant 3 : i32
    %291 = vector.broadcast %c3_i32_55 : i32 to vector<128x128xi32>
    %292 = arith.shrsi %290, %291 : vector<128x128xi32>
    %293 = arith.cmpi eq, %292, %283 : vector<128x128xi32>
    %294 = arith.andi %288, %293 : vector<128x128xi1>
    %c64_i32_56 = arith.constant 64 : i32
    %295 = vector.broadcast %c64_i32_56 : i32 to vector<128x128xi32>
    %296 = arith.cmpi sge, %282, %295 : vector<128x128xi32>
    %c67_i32_57 = arith.constant 67 : i32
    %297 = vector.broadcast %c67_i32_57 : i32 to vector<128x128xi32>
    %298 = arith.cmpi slt, %282, %297 : vector<128x128xi32>
    %299 = arith.andi %296, %298 : vector<128x128xi1>
    %c64_i32_58 = arith.constant 64 : i32
    %300 = vector.broadcast %c64_i32_58 : i32 to vector<128x128xi32>
    %301 = arith.subi %282, %300 : vector<128x128xi32>
    %302 = arith.cmpi eq, %301, %283 : vector<128x128xi32>
    %303 = arith.andi %299, %302 : vector<128x128xi1>
    %304 = arith.ori %294, %303 : vector<128x128xi1>
    %cst_59 = arith.constant 1.000000e+00 : f32
    %cst_60 = arith.constant 0.000000e+00 : f32
    %305 = vector.broadcast %cst_59 : f32 to vector<128x128xf32>
    %306 = vector.broadcast %cst_60 : f32 to vector<128x128xf32>
    %307 = arith.select %304, %305, %306 : vector<128x128xi1>, vector<128x128xf32>
    %cst_61 = arith.constant dense<0.000000e+00> : vector<8x128xf32>
    %308 = tpu.matmul %281, %307, %cst_61 {dimension_numbers = #tpu.dot_dimension_numbers<[1], [0], [0], [1], [0, 0, 1, 1], [], []>} : vector<8x128xf32>, vector<128x128xf32>, vector<8x128xf32> -> vector<8x128xf32>
    %c0_62 = arith.constant 0 : index
    %c0_63 = arith.constant 0 : index
    %309 = vector.load %arg2[%c0_62, %c0_63] : memref<8x128xf32, #tpu.memory_space<vmem>>, vector<8x128xf32>
    tpu.vector_store %arg2[%c0_62, %c0_63], %308 {strides = array<i32>} : memref<8x128xf32, #tpu.memory_space<vmem>>, vector<8x128xf32>,
    return
  }
}

</mosaic_0001>

<bundles_post_ra>
// kernel: lew_hybrid_forward.1
= control target key start
LH: loop header
LB: loop body
LE: loop exit
PB: predicated region body
PF: predicated region fallthrough
CT: control target
= control target key end

     0   :  { %9 = vsyncpa [#allocation3], 0  ;;  %s841_s15 = smov [#allocation2]   ;;  %s1101_s0 = inlined_call_operand.vmem [shape: f32[35], index: 0, kind: input, shape index: {}]   ;;  %s1102_s1 = inlined_call_operand.vmem [shape: f32[8,4], index: 1, kind: input, shape index: {}]   ;;  %s1103_s2 = inlined_call_operand.vmem [shape: f32[8,128], index: 2, kind: output, shape index: {0}]   ;;  %s1104_s3 = inlined_call_operand.vmem [shape: f32[1,128], index: 3, kind: output, shape index: {1}]  }
   0x1   :  { %s15_s14 = sshll.u32 %s1101_s0, 4  ;;  %s16_s14 = int_to_ptr.vmem [resolvable:$true] %s15_s14 }
   0x2   :  { %18 = dma.vmem_to_smem %s16_s14, 16, %s841_s15, [#allocation3]  }
   0x3   :  { %839 = dma.done.wait [#allocation3], 16  }
   0x4   :  { %840 = vsyncadd [#allocation3], 4294967280 }
   0x5   :  { %25 = sfence }
   0x6   :  { %v61_v0 = vlaneseq  ;;  %s868_s16 = sld [smem:[#allocation2]]  ;;  %vm238_vm2 = vcmask 1043456   ;;  %vm234_vm4 = vcmask 31744   ;;  %vm140_vm5 = vcmask 1040384  }
   0x7   :  { %s870_s17 = sld [smem:[#allocation2 + $0x1]] }
   0x8   :  { %v873_v1 = vand.u32 127, %v61_v0  ;;  %s875_s18 = sld [smem:[#allocation2 + $0x2]] }
   0x9   :  { %s877_s19 = sld [smem:[#allocation2 + $0x3]] }
   0xa   :  { %v63_v2 = vshra.s32 %v873_v1, 6  ;;  %v68_v3 = vshra.s32 %v873_v1, 5  ;;  %v73_v4 = vshra.s32 %v873_v1, 4  ;;  %v78_v5 = vshra.s32 %v873_v1, 3  ;;  %s883_s0 = sld [smem:[#allocation2 + $0x4]] }
   0xb   :  { %v83_v6 = vshra.s32 %v873_v1, 2  ;;  %v88_v7 = vshra.s32 %v873_v1, 1  ;;  %v93_v8 = vand.u32 1, %v873_v1  ;;  %s888_s20 = sld [smem:[#allocation2 + $0x5]]  ;;  %vm224_vm0 = vcmp.lt.s32.totalorder %v873_v1, 32 }
   0xc   :  { %v64_v9 = vand.u32 1, %v63_v2  ;;  %v69_v10 = vand.u32 1, %v68_v3  ;;  %v74_v11 = vand.u32 1, %v73_v4  ;;  %v79_v12 = vand.u32 1, %v78_v5  ;;  %s890_s21 = sld [smem:[#allocation2 + $0x7]] }
   0xd   :  { %v84_v13 = vand.u32 1, %v83_v6  ;;  %v89_v14 = vand.u32 1, %v88_v7  ;;  %s892_s22 = sld [smem:[#allocation2 + $0x8]]  ;;  %v94_v21 = vmul.u32 2, %v93_v8  ;;  %v99_v34 = vstv %s868_s16 }
   0xe   :  { %v65_v15 = vmul.u32 2, %v64_v9  ;;  %v70_v16 = vmul.u32 2, %v69_v10  ;;  %v75_v17 = vmul.u32 2, %v74_v11  ;;  %v80_v18 = vmul.u32 2, %v79_v12  ;;  %s894_s23 = sld [smem:[#allocation2 + $0x9]]  ;;  %v233_v12 = vld [vmem:[%s1102_s1] sm:$0xff] }
   0xf   :  { %v85_v19 = vmul.u32 2, %v84_v13  ;;  %v90_v20 = vmul.u32 2, %v89_v14  ;;  %s896_s24 = sld [smem:[#allocation2 + $0xa]]  ;;  %v756_v32 = vadd.s32 4294967295, %v94_v21  ;;  %v103_v38 = vstv %s870_s17 }
  0x10   :  { %v750_v22 = vadd.s32 4294967295, %v65_v15  ;;  %v751_v23 = vadd.s32 4294967295, %v70_v16  ;;  %v752_v24 = vadd.s32 4294967295, %v75_v17  ;;  %v753_v25 = vadd.s32 4294967295, %v80_v18  ;;  %s726_s25 = sld [smem:[#allocation2 + $0xb]] }
  0x11   :  { %v754_v26 = vadd.s32 4294967295, %v85_v19  ;;  %v755_v27 = vadd.s32 4294967295, %v90_v20  ;;  %s898_s26 = sld [smem:[#allocation2 + $0xc]]  ;;  %v108_v42 = vstv %s875_s18  ;;  %v113_v46 = vstv %s877_s19 }
  0x12   :  { %v900_v28 = vcvt.s32.f32 %v750_v22  ;;  %v902_v29 = vcvt.s32.f32 %v751_v23  ;;  %v904_v30 = vcvt.s32.f32 %v752_v24  ;;  %s906_s27 = sld [smem:[#allocation2 + $0xd]]  ;;  %v908_v31 = vcvt.s32.f32 %v753_v25 }
  0x13   :  { %v97_v33 = vstv %s890_s21  ;;  %s912_s28 = sld [smem:[#allocation2 + $0x6]]  ;;  %v914_v35 = vcvt.s32.f32 %v754_v26  ;;  %v101_v37 = vstv %s892_s22  ;;  %v919_v39 = vcvt.s32.f32 %v755_v27 }
  0x14   :  { %v98_v36 = vmul.f32 %v97_v33, %v900_v28  ;;  %v102_v40 = vmul.f32 %v101_v37, %v902_v29  ;;  %v106_v41 = vstv %s894_s23  ;;  %v927_v47 = vcvt.s32.f32 %v756_v32  ;;  %s986_s1 = sld [smem:[#allocation2 + $0xe]] }
  0x15   :  { %v107_v44 = vmul.f32 %v106_v41, %v904_v30  ;;  %v111_v45 = vstv %s896_s24  ;;  %v118_v53 = vstv %s883_s0  ;;  %v123_v59 = vstv %s888_s20  ;;  %s988_s4 = sld [smem:[#allocation2 + $0xf]] }
  0x16   :  { %v100_v43 = vadd.f32 %v99_v34, %v98_v36  ;;  %v104_v48 = vadd.f32 %v103_v38, %v102_v40  ;;  %v112_v49 = vmul.f32 %v111_v45, %v908_v31  ;;  %v116_v50 = vstv %s726_s25  ;;  %s991_s5 = sld [smem:[#allocation2 + $0x15]] }
  0x17   :  { %v109_v51 = vadd.f32 %v108_v42, %v107_v44  ;;  %v117_v52 = vmul.f32 %v116_v50, %v914_v35  ;;  %v121_v54 = vstv %s898_s26  ;;  %v939_v10 = vshrl.u32 %v61_v0, 7  ;;  %s994_s6 = sld [smem:[#allocation2 + $0x16]] }
  0x18   :  { %v105_v55 = vmul.f32 %v104_v48, %v100_v43  ;;  %v114_v56 = vadd.f32 %v113_v46, %v112_v49  ;;  %v122_v57 = vmul.f32 %v121_v54, %v919_v39  ;;  %v126_v58 = vstv %s906_s27  ;;  %s997_s7 = sld [smem:[#allocation2 + $0x17]] }
  0x19   :  { %v119_v61 = vadd.f32 %v118_v53, %v117_v52  ;;  %v127_v62 = vmul.f32 %v126_v58, %v927_v47  ;;  %v128_v63 = vstv %s912_s28  ;;  %v225_v11 = vand.u32 3, %v873_v1  ;;  %s1001_s8 = sld [smem:[#allocation2 + $0x1d]] }
  0x1a   :  { %v110_v60 = vmul.f32 %v109_v51, %v105_v55  ;;  %v124_v3 = vadd.f32 %v123_v59, %v122_v57  ;;  %v842_v13 = vmov 0.0   ;;  %v843_v22 = vmov 128.0   ;;  %s1004_s9 = sld [smem:[#allocation2 + $0x1e]] }
  0x1b   :  { %v129_v5 = vadd.f32 %v128_v63, %v127_v62  ;;  %vm226_vm1 = vcmp.eq.s32.totalorder %v225_v11, %v939_v10  ;;  %v277_v42 = vadd.s32 120, %v939_v10  ;;  %v342_v43 = vadd.s32 32, %v873_v1  ;;  %s1007_s10 = sld [smem:[#allocation2 + $0x1f]] }
  0x1c   :  { %v115_v2 = vmul.f32 %v114_v56, %v110_v60  ;;  %vm227_vm3 = vmand %vm224_vm0, %vm226_vm1  ;;  %v276_v44 = vadd.s32 112, %v939_v10  ;;  %v844_v45 = vmov 1.0   ;;  %v275_v46 = vadd.s32 104, %v939_v10  ;;  %s1010_s11 = sld [smem:[#allocation2 + $0x10]] }
  0x1d   :  { %v228_v14 = vsel %vm227_vm3, 1.0, %v842_v13  ;;  %vm358_vm7 = vcmp.eq.s32.totalorder %v277_v42, %v342_v43  ;;  %v274_v48 = vadd.s32 96, %v939_v10  ;;  %v273_v49 = vadd.s32 88, %v939_v10  ;;  %s1013_s13 = sld [smem:[#allocation2 + $0x18]] }
  0x1e   :  { %v120_v4 = vmul.f32 %v119_v61, %v115_v2  ;;  %757 = vmatpush.msk.msra.mxu0 %vm238_vm2, %v228_v14  ;;  %759 = vmatpush.msk.msra.mxu1 %vm358_vm7, %v844_v45  ;;  %vm357_vm8 = vcmp.eq.s32.totalorder %v276_v44, %v342_v43  ;;  %vm356_vm9 = vcmp.eq.s32.totalorder %v275_v46, %v342_v43  ;;  %v272_v50 = vadd.s32 80, %v939_v10  ;;  %s1016_s14 = sld [smem:[#allocation2 + $0x11]] }
  0x1f   :  { %758 = vmatmul.msk.f32.vlgmr.msra.gmra.mxu0 %vm234_vm4, %v233_v12  ;;  %vm355_vm10 = vcmp.eq.s32.totalorder %v274_v48, %v342_v43  ;;  %vm354_vm11 = vcmp.eq.s32.totalorder %v273_v49, %v342_v43  ;;  %v271_v51 = vadd.s32 72, %v939_v10  ;;  %v966_v52 = vadd.s32 64, %v939_v10  ;;  %s1018_s16 = sld [smem:[#allocation2 + $0x19]] }
  0x20   :  { %v125_v6 = vmul.f32 %v124_v3, %v120_v4  ;;  %760 = vmatpush.msk.msra.mxu1 %vm357_vm8, %v844_v45  ;;  %vm353_vm12 = vcmp.eq.s32.totalorder %v272_v50, %v342_v43  ;;  %v971_v53 = vadd.s32 56, %v939_v10  ;;  %v976_v54 = vadd.s32 48, %v939_v10  ;;  %s1021_s18 = sld [smem:[#allocation2 + $0x12]] }
  0x21   :  { %vm352_vm13 = vcmp.eq.s32.totalorder %v271_v51, %v342_v43  ;;  %vm351_vm14 = vcmp.eq.s32.totalorder %v966_v52, %v342_v43  ;;  %v267_v55 = vadd.s32 40, %v939_v10  ;;  %v266_v56 = vadd.s32 32, %v939_v10  ;;  %s1024_s19 = sld [smem:[#allocation2 + $0x1a]] }
  0x22   :  { %v130_v7 = vmul.f32 %v129_v5, %v125_v6  ;;  %761 = vmatpush.msk.msra.mxu1 %vm356_vm9, %v844_v45  ;;  %vm350_vm15 = vcmp.eq.s32.totalorder %v971_v53, %v342_v43  ;;  %v265_v57 = vadd.s32 24, %v939_v10  ;;  %v264_v58 = vadd.s32 16, %v939_v10  ;;  %s1030_s0 = sld [smem:[#allocation2 + $0x13]] }
  0x23   :  { %vm349_vm0 = vcmp.eq.s32.totalorder %v976_v54, %v342_v43  ;;  %vm348_vm1 = vcmp.eq.s32.totalorder %v267_v55, %v342_v43  ;;  %v263_v59 = vadd.s32 8, %v939_v10  ;;  %vm347_vm2 = vcmp.eq.s32.totalorder %v266_v56, %v342_v43  ;;  %s1036_s20 = sld [smem:[#allocation2 + $0x1b]] }
  0x24   :  { %v131_v8 = vmul.f32 %v130_v7, %v130_v7  ;;  %762 = vmatpush.msk.msra.mxu1 %vm355_vm10, %v844_v45  ;;  %v297_v60 = vshra.s32 %v265_v57, 2  ;;  %v296_v61 = vshra.s32 %v264_v58, 2  ;;  %v294_v63 = vshra.s32 %v939_v10, 2  ;;  %s1040_s21 = sld [smem:[#allocation2 + $0x14]] }
  0x25   :  { %v295_v62 = vshra.s32 %v263_v59, 2  ;;  %v162_v2 = vstv %s991_s5  ;;  %v166_v4 = vstv %s986_s1  ;;  %v190_v5 = vstv %s1001_s8  ;;  %s1044_s22 = sld [smem:[#allocation2 + $0x1c]] }
  0x26   :  { %v132_v9 = vmul.f32 6.4, %v131_v8  ;;  %763 = vmatpush.msk.msra.mxu1 %vm354_vm11, %v844_v45  ;;  %vm313_vm3 = vcmp.eq.s32.totalorder %v297_v60, %v873_v1  ;;  %vm312_vm4 = vcmp.eq.s32.totalorder %v296_v61, %v873_v1  ;;  %v194_v6 = vstv %s994_s6  ;;  %s747_s23 = sld [smem:[#allocation2 + $0x20]] }
  0x27   :  { %v164_v8 = vstv %s1004_s9  ;;  %v192_v11 = vstv %s1007_s10  ;;  %v197_v12 = vstv %s997_s7  ;;  %s748_s24 = sld [smem:[#allocation2 + $0x21]]  ;;  %vm229_vm7 = vcmp.ge.s32.totalorder %v873_v1, 32 }
  0x28   :  { %819 = vtanh.f32 %v132_v9  ;;  %764 = vmatpush.msk.msra.mxu1 %vm353_vm12, %v844_v45  ;;  %v169_v9 = vstv %s988_s4  ;;  %vm230_vm8 = vcmp.lt.s32.totalorder %v873_v1, 40  ;;  %s749_s25 = sld [smem:[#allocation2 + $0x22]]  ;;  %vm412_vm10 = vcmp.ge.s32.totalorder %v873_v1, 40 }
  0x29   :  { %vm231_vm9 = vmand %vm229_vm7, %vm230_vm8  ;;  %vm413_vm11 = vcmp.lt.s32.totalorder %v873_v1, 64  ;;  %vm420_vm7 = vcmp.lt.s32.totalorder %v873_v1, 67 }
  0x2a   :  { %765 = vmatpush.msk.msra.mxu1 %vm352_vm13, %v844_v45  ;;  %vm414_vm12 = vmand %vm412_vm10, %vm413_vm11 }
  0x2b   :  { %v212_v46 = vstv %s1044_s22 }
  0x2c   :  { %766 = vmatpush.msk.msra.mxu1 %vm351_vm14, %v844_v45  ;;  %v213_v57 = vmul.f32 %v212_v46, %v927_v47  ;;  %v188_v61 = vstv %s747_s23 }
  0x2e   :  { %v820_v0 = vpop.eup %819  ;;  %767 = vmatpush.msk.msra.mxu1 %vm350_vm15, %v844_v45  ;;  %vm583_vm15 = vcmp.lt.s32.totalorder %v966_v52, 67 }
  0x2f   :  { %821 = vlog2.f32 %v820_v0  ;;  %v167_v0 = vmul.f32 %v166_v4, %v900_v28 }
  0x30   :  { %768 = vmatpush.msk.msra.mxu1 %vm349_vm0, %v844_v45  ;;  %vm630_vm0 = vcmp.eq.s32.totalorder %v939_v10, %v873_v1 }
  0x32   :  { %769 = vmatpush.msk.msra.mxu1 %vm348_vm1, %v844_v45  ;;  %vm646_vm1 = vmand %vm583_vm15, %vm630_vm0 }
  0x33   :  { %807 = vmatpush.msk.msra.mxu3 %vm646_vm1, %v844_v45 }
  0x34   :  { %770 = vmatpush.msk.msra.mxu1 %vm347_vm2, %v844_v45 }
  0x35   :  { %v822_v15 = vpop.eup %821 }
  0x36   :  { %v135_v16 = vmul.f32 0.6931472, %v822_v15  ;;  %771 = vmatpush.msk.msra.mxu1 %vm313_vm3, %v844_v45 }
  0x38   :  { %v136_v17 = vmul.f32 0.3, %v135_v16  ;;  %772 = vmatpush.msk.msra.mxu1 %vm312_vm4, %v844_v45  ;;  %v195_v16 = vmul.f32 %v194_v6, %v900_v28 }
  0x3a   :  { %v137_v18 = vmul.f32 1.442695, %v136_v17  ;;  %v172_v17 = vstv %s1010_s11 }
  0x3b   :  { %v173_v28 = vmul.f32 %v172_v17, %v904_v30 }
  0x3c   :  { %823 = vpow2.f32 %v137_v18  ;;  %v200_v18 = vstv %s1013_s13 }
  0x3d   :  { %825 = vrcp.f32 %v843_v22  ;;  %v198_v22 = vmul.f32 %v197_v12, %v902_v29  ;;  %v783_v12 = vadd.s32 4294967256, %v971_v53 }
  0x42   :  { %v824_v19 = vpop.eup %823 }
  0x43   :  { %v948_v20 = vmul.f32 0.93524843, %v824_v19  ;;  %v826_v23 = vpop.eup %825 }
  0x44   :  { %v152_v24 = vmul.f32 128.0, %v826_v23  ;;  %vm156_vm6 = vweird.f32 %v826_v23 }
  0x45   :  { %v141_v21 = vsel %vm140_vm5, %v948_v20, 0.0  ;;  %vm311_vm5 = vcmp.eq.s32.totalorder %v295_v62, %v873_v1  ;;  %v216_v62 = vstv %s748_s24 }
  0x46   :  { %142 = vadd.xlane.f32.xlu0 %v141_v21  ;;  %v153_v25 = vsub.f32 1.0, %v152_v24  ;;  %773 = vmatpush.msk.msra.mxu1 %vm311_vm5, %v844_v45  ;;  %v203_v24 = vstv %s1018_s16  ;;  %vm423_vm5 = vcmask 64512  }
  0x48   :  { %v154_v33 = vmul.f32 %v826_v23, %v153_v25 }
  0x4a   :  { %v155_v37 = vadd.f32 %v826_v23, %v154_v33  ;;  %v206_v33 = vstv %s1024_s19 }
  0x4b   :  { %v207_v44 = vmul.f32 %v206_v33, %v914_v35 }
  0x4c   :  { %v157_v41 = vsel %vm156_vm6, %v826_v23, %v155_v37  ;;  %vm310_vm6 = vcmp.eq.s32.totalorder %v294_v63, %v873_v1  ;;  %v175_v23 = vstv %s1016_s14 }
  0x4d   :  { %774 = vmatpush.msk.msra.mxu1 %vm310_vm6, %v844_v45  ;;  %vm419_vm6 = vcmp.ge.s32.totalorder %v873_v1, 64 }
  0x4e   :  { %vm421_vm8 = vmand %vm419_vm6, %vm420_vm7 }
  0xb9   :  { %v143_v26 = vpop.xlane.xlu0 %142 }
  0xba   :  { %v144_v27 = vrot.slane %v143_v26, 4 }
  0xbc   :  { %v145_v32 = vadd.f32 %v144_v27, %v143_v26  ;;  %v201_v27 = vmul.f32 %v200_v18, %v904_v30  ;;  %v184_v30 = vstv %s1040_s21 }
  0xbd   :  { %v185_v56 = vmul.f32 %v184_v30, %v927_v47  ;;  %v219_v47 = vstv %s749_s25 }
  0xbe   :  { %v146_v34 = vrot.slane %v145_v32, 2 }
  0xc0   :  { %v147_v36 = vadd.f32 %v146_v34, %v145_v32  ;;  %v178_v32 = vstv %s1021_s18 }
  0xc1   :  { %v179_v42 = vmul.f32 %v178_v32, %v914_v35 }
  0xc2   :  { %v148_v38 = vrot.slane %v147_v36, 1 }
  0xc4   :  { %v149_v40 = vadd.f32 %v148_v38, %v147_v36  ;;  %v176_v36 = vmul.f32 %v175_v23, %v908_v31  ;;  %v204_v38 = vmul.f32 %v203_v24, %v908_v31 }
  0xc6   :  { %811 = vpush %v149_v40  ;;  %v181_v40 = vstv %s1030_s0 }
  0xc7   :  { %813 = vpush %v157_v41  ;;  %v182_v50 = vmul.f32 %v181_v40, %v919_v39 }
  0xf7   :  { %s812_s12 = spop %811 }
  0xf8   :  { %s814_s15 = spop %813 }
  0xf9   :  { %s159_s17 = smul.f32 %s814_s15, %s812_s12 }
  0xfb   :  { %v160_v3 = vstv %s159_s17 }
  0xfc   :  { %v161_v7 = vsub.f32 %v948_v20, %v160_v3  ;;  %v170_v20 = vmul.f32 %v169_v9, %v902_v29  ;;  %v209_v29 = vstv %s1036_s20  ;;  %v259_v3 = vpop.f32.mrf.mxu0 }
  0xfd   :  { %v210_v51 = vmul.f32 %v209_v29, %v919_v39 }
  0xfe   :  { %v163_v14 = vmul.f32 %v162_v2, %v161_v7  ;;  %v191_v15 = vmul.f32 %v190_v5, %v161_v7  ;;  %v232_v2 = vsel %vm231_vm9, 1.0, %v842_v13 }
  0xff   :  { %v260_v6 = vadd.f32 %v259_v3, %v232_v2 }
 0x100   :  { %v165_v19 = vadd.f32 %v164_v8, %v163_v14  ;;  %v193_v21 = vadd.f32 %v192_v11, %v191_v15  ;;  %v415_v11 = vand.u32 7, %v873_v1  ;;  %v782_v14 = vadd.s32 4294967256, %v976_v54 }
 0x102   :  { %v168_v25 = vadd.f32 %v167_v0, %v165_v19  ;;  %v196_v26 = vadd.f32 %v195_v16, %v193_v21  ;;  %vm416_vm13 = vcmp.eq.s32.totalorder %v415_v11, %v939_v10  ;;  %v518_v0 = vshra.s32 %v783_v12, 3 }
 0x103   :  { %vm417_vm14 = vmand %vm414_vm12, %vm416_vm13  ;;  %v517_v15 = vshra.s32 %v782_v14, 3  ;;  %v516_v16 = vshra.s32 %v939_v10, 3 }
 0x104   :  { %v171_v34 = vadd.f32 %v170_v20, %v168_v25  ;;  %v199_v37 = vadd.f32 %v198_v22, %v196_v26  ;;  %775 = vmatpush.msk.msra.mxu2 %vm417_vm14, %v844_v45  ;;  %vm534_vm2 = vcmp.eq.s32.totalorder %v518_v0, %v873_v1 }
 0x105   :  { %vm533_vm3 = vcmp.eq.s32.totalorder %v517_v15, %v873_v1  ;;  %808 = vmatpush.msk.msra.mxu3 %vm534_vm2, %v844_v45  ;;  %vm532_vm4 = vcmp.eq.s32.totalorder %v516_v16, %v873_v1 }
 0x106   :  { %v174_v41 = vadd.f32 %v173_v28, %v171_v34  ;;  %v202_v43 = vadd.f32 %v201_v27, %v199_v37 }
 0x107   :  { %809 = vmatpush.msk.msra.mxu3 %vm533_vm3, %v844_v45 }
 0x108   :  { %v177_v48 = vadd.f32 %v176_v36, %v174_v41  ;;  %v205_v49 = vadd.f32 %v204_v38, %v202_v43 }
 0x109   :  { %810 = vmatpush.msk.msra.mxu3 %vm532_vm4, %v844_v45  ;;  %v422_v45 = vsel %vm421_vm8, 1.0, %v842_v13 }
 0x10a   :  { %v180_v55 = vadd.f32 %v179_v42, %v177_v48  ;;  %v208_v31 = vadd.f32 %v207_v44, %v205_v49 }
 0x10b   :  { %697 = vmatpush.msra.mxu3 %v842_v13 }
 0x10c   :  { %v183_v35 = vadd.f32 %v182_v50, %v180_v55  ;;  %v211_v58 = vadd.f32 %v210_v51, %v208_v31 }
 0x10d   :  { %698 = vmatpush.msra.mxu3 %v842_v13 }
 0x10e   :  { %v186_v59 = vadd.f32 %v185_v56, %v183_v35  ;;  %v214_v60 = vadd.f32 %v213_v57, %v211_v58 }
 0x10f   :  { %699 = vmatpush.msra.mxu3 %v842_v13 }
 0x110   :  { %v187_v63 = vmax.f32 %v186_v59, 0.0  ;;  %v215_v39 = vmax.f32 %v214_v60, 0.0 }
 0x111   :  { %700 = vmatpush.msra.mxu3 %v842_v13 }
 0x112   :  { %v189_v4 = vmul.f32 %v188_v61, %v187_v63  ;;  %v217_v5 = vmul.f32 %v216_v62, %v215_v39 }
 0x113   :  { %701 = vmatpush.msra.mxu3 %v842_v13 }
 0x114   :  { %v218_v7 = vadd.f32 %v217_v5, %v189_v4 }
 0x116   :  { %v220_v8 = vadd.f32 %v219_v47, %v218_v7 }
 0x118   :  { %221 = vst [vmem:[%s1104_s3] sm:$0x1] %v220_v8  ;;  %v262_v9 = vmul.f32 %v260_v6, %v220_v8 }
 0x11a   :  { %407 = vmatmul.f32.vlgmr.msra.gmra.mxu1 %v262_v9 }
 0x197   :  { %v408_v10 = vpop.f32.mrf.mxu1 }
 0x198   :  { %v411_v52 = vmax.f32 %v408_v10, 0.0 }
 0x19a   :  { %776 = vmatmul.msk.f32.vlgmr.msra.gmra.mxu2 %vm423_vm5, %v411_v52 }
 0x21d   :  { %v444_v53 = vpop.f32.mrf.mxu2 }
 0x21e   :  { %v445_v54 = vadd.f32 %v444_v53, %v422_v45 }
 0x220   :  { %v447_v17 = vmul.f32 %v445_v54, %v220_v8 }
 0x222   :  { %702 = vmatmul.f32.vlgmr.msra.gmra.mxu3 %v447_v17 }
 0x2a5   :  { %v703_v18 = vpop.f32.mrf.mxu3 }
 0x2a6   :  { %706 = vst [vmem:[%s1103_s2] sm:$0xff] %v703_v18 }
 0x2a7   :  { %715 = vsyncpa [#allocation3], 1 }

</bundles_post_ra>
